<compile_context>
chip_gen: v5e
topology: v5e:2x2
jax: 0.10.0
libtpu: 0.0.40
codegen_flags: <defaults>
</compile_context>

<pallas_src>
import math

import jax
import jax.numpy as jnp
from jax.experimental import pallas as pl
from jax.experimental.pallas import tpu as pltpu


def _round_up(x, m):
    return ((x + m - 1) // m) * m


def entity_selector_kernel(hidden_ref, ents_ref, keys_ref, w_slab_ref,
                           slope_ref, out_ref):
    """One batch tile.  Batch sits on the 128-lane axis everywhere.

    hidden_ref : (Ha, Bt)        rows = [hidden(H) ; 1 ; 0-pad], Ha = round_up(H+1, 8)
    ents_ref   : (E, S, Bt)
    keys_ref   : (E, S, Bt)
    w_slab_ref : (L*Ha + 2S, Ha) [W_aug_0; ...; W_aug_{L-1}; W_bil_aug]
    slope_ref  : (Ha, L)         PReLU slopes (rows >= H are zero)
    out_ref    : (S + 2E, Bt)    rows = [selected(S) ; dist(E) ; acts(E)]
    """
    Ha = hidden_ref.shape[0]
    L = slope_ref.shape[1]
    E, S, _ = ents_ref.shape

    # self.preprocess: eNL x (Linear -> PReLU); edpt=0 -> dropout no-op.
    # Bias rides the MXU via the augmented weight / constant-one input row.
    x = hidden_ref[...]                                   # (Ha, Bt)
    for i in range(L):                                    # static unroll, L small
        w = w_slab_ref[i * Ha:(i + 1) * Ha, :]            # (Ha, Ha) 8-aligned ref slice
        a = slope_ref[:, i:i + 1]                         # (Ha, 1) PReLU slope
        y = jnp.dot(w, x, preferred_element_type=jnp.float32)
        x = jnp.maximum(y, 0.0) + a * jnp.minimum(y, 0.0)

    # BilinearAttention(2*eSize, hSize, 1, bias=False, act='sigmoid'):
    #   acts[e,b] = [ents|keys][e,:,b] . (W_bil @ preprocessed[:,b])
    w_bil = w_slab_ref[L * Ha:, :]                                 # (2S, Ha)
    v = jnp.dot(w_bil, x, preferred_element_type=jnp.float32)      # (2S, Bt)

    ents = ents_ref[...]                                           # (E, S, Bt)
    keys = keys_ref[...]                                           # (E, S, Bt)
    acts = (jnp.sum(ents * v[jnp.newaxis, :S, :], axis=1)
            + jnp.sum(keys * v[jnp.newaxis, S:, :], axis=1))       # (E, Bt)
    # Exact sigmoid (approx reciprocal removed per correctness review).
    dist = 1.0 / (1.0 + jnp.exp(-acts))                            # (E, Bt)

    # Attender(entities, entity_dist, eRed='sum')
    sel = jnp.sum(ents * dist[:, jnp.newaxis, :], axis=0)          # (S, Bt)

    # Coalesced, 8-sublane-aligned, 128-lane-dense stores.
    out_ref[0:S, :] = sel.astype(out_ref.dtype)
    out_ref[S:S + E, :] = dist.astype(out_ref.dtype)
    out_ref[S + E:, :] = acts.astype(out_ref.dtype)


def prepare_entity_selector_params(w_pre, b_pre, a_pre, w_bil):
    """One-time parameter re-layout (do NOT call per forward pass).

    w_pre: (L, H, H) PyTorch Linear weights, (out, in) per layer.
    b_pre: (L, H)    Linear biases.
    a_pre: (L, H)    PReLU slopes.
    w_bil: (2*eSize, hSize) = nn.Bilinear weight[0] (bias=False, out dim 1).

    Returns (w_slab, slope_slab):
      w_slab    : (L*Ha + 2S, Ha) f32, Ha = round_up(H+1, 8); each layer block is
                  [[W_i, b_i, 0], [0.., 1 (ones-row propagation), 0..], [0]];
                  the trailing (2S, Ha) block is W_bil zero-padded on input dim.
      slope_slab: (Ha, L) f32 PReLU slopes (rows >= H zero).
    """
    L, H, _ = w_pre.shape
    S2 = w_bil.shape[0]                       # 2 * eSize
    Ha = _round_up(H + 1, 8)

    w_aug = jnp.zeros((L, Ha, Ha), jnp.float32)
    w_aug = w_aug.at[:, :H, :H].set(w_pre.astype(jnp.float32))
    w_aug = w_aug.at[:, :H, H].set(b_pre.astype(jnp.float32))      # bias column
    w_aug = w_aug.at[:, H, H].set(1.0)                              # propagate the ones row
    w_bil_aug = jnp.zeros((S2, Ha), jnp.float32).at[:, :H].set(w_bil.astype(jnp.float32))

    w_slab = jnp.concatenate([w_aug.reshape(L * Ha, Ha), w_bil_aug], axis=0)
    slope_slab = jnp.zeros((Ha, L), jnp.float32).at[:H, :].set(a_pre.T.astype(jnp.float32))
    return (w_slab, slope_slab)


def entity_selector(hidden, entities, keys, prev_attn, prepared_params,
                    *, b_tile_max=1024, core_parallel=False):
    """EntitySelector forward.

    hidden  : (..., H)        entities/keys: (..., E, S)
    All leading dims are flattened onto the lane (batch) axis, so stacking the
    EntNet time loop (T, B, ...) amortizes the fixed pallas_call cost over T*B
    examples in a single launch.
    core_parallel=True uses pltpu.CORE_PARALLEL on the batch grid axis (v7x,
    2 TCs/chip; make sure n_tiles >= 2).  Default "parallel" is safe everywhere.
    """
    del prev_attn                      # opt.rec = False -> pass-through
    w_slab, slope_slab = prepared_params

    lead = tuple(hidden.shape[:-1])
    H = hidden.shape[-1]
    E, S = entities.shape[-2], entities.shape[-1]
    Ha = w_slab.shape[1]
    L = slope_slab.shape[1]
    assert entities.shape == keys.shape and tuple(entities.shape[:-2]) == lead
    assert Ha == _round_up(H + 1, 8), "prepared params built for a different hSize"
    assert w_slab.shape[0] == L * Ha + 2 * S, "prepared params built for a different eSize"

    N = math.prod(lead) if lead else 1
    hidden2 = hidden.reshape(N, H)
    ents2 = entities.reshape(N, E, S)
    keys2 = keys.reshape(N, E, S)

    # Lane-dense batch tiling: pad N up to a multiple of 128 (full vregs even
    # for tiny production batches), tile at up to b_tile_max per grid step.
    b_tile = min(b_tile_max, _round_up(max(N, 128), 128))
    n_tiles = pl.cdiv(N, b_tile)
    N_pad = n_tiles * b_tile

    # Lane-major re-layout (batch on lanes).  Hidden also gets the constant-one
    # row (bias folded into the MXU) and zero rows up to Ha.
    hidden_t = hidden2.astype(jnp.float32).T                       # (H, N)
    hidden_aug = jnp.concatenate(
        [hidden_t,
         jnp.ones((1, N), jnp.float32),
         jnp.zeros((Ha - H - 1, N), jnp.float32)], axis=0)         # (Ha, N)
    ents_t = jnp.transpose(ents2.astype(jnp.float32), (1, 2, 0))   # (E, S, N)
    keys_t = jnp.transpose(keys2.astype(jnp.float32), (1, 2, 0))   # (E, S, N)
    if N_pad != N:
        hidden_aug = jnp.pad(hidden_aug, ((0, 0), (0, N_pad - N)))
        ents_t = jnp.pad(ents_t, ((0, 0), (0, 0), (0, N_pad - N)))
        keys_t = jnp.pad(keys_t, ((0, 0), (0, 0), (0, N_pad - N)))

    dim_sem = (pltpu.CORE_PARALLEL,) if core_parallel else ("parallel",)

    grid_spec = pltpu.PrefetchScalarGridSpec(
        num_scalar_prefetch=0,
        grid=(n_tiles,),
        in_specs=[
            pl.BlockSpec((Ha, b_tile), lambda i: (0, i)),
            pl.BlockSpec((E, S, b_tile), lambda i: (0, 0, i)),
            pl.BlockSpec((E, S, b_tile), lambda i: (0, 0, i)),
            pl.BlockSpec((L * Ha + 2 * S, Ha), lambda i: (0, 0)),   # resident weights
            pl.BlockSpec((Ha, L), lambda i: (0, 0)),                # resident slopes
        ],
        out_specs=pl.BlockSpec((S + 2 * E, b_tile), lambda i: (0, i)),
    )
    out = pl.pallas_call(
        entity_selector_kernel,
        out_shape=jax.ShapeDtypeStruct((S + 2 * E, N_pad), jnp.float32),
        grid_spec=grid_spec,
        compiler_params=pltpu.CompilerParams(dimension_semantics=dim_sem),
    )(hidden_aug, ents_t, keys_t, w_slab, slope_slab)

    selected = out[:S, :N].T.reshape(*lead, S)          # selected_entities
    dist = out[S:S + E, :N].T.reshape(*lead, E)         # entity_dist
    acts = out[S + E:, :N].T.reshape(*lead, E)          # activations
    return selected, dist, acts


if __name__ == "__main__":
    B, H, E, S, L = 2, 32, 8, 8, 2     # batch, hSize, num_entities, eSize, eNL
    T = 4                              # EntNet steps folded into one pallas_call

    key = jax.random.PRNGKey(0)
    ks = jax.random.split(key, 6)
    hidden = jax.random.normal(ks[0], (T, B, H), jnp.float32)
    entities = jax.random.normal(ks[1], (T, B, E, S), jnp.float32)
    keys_in = jax.random.normal(ks[2], (T, B, E, S), jnp.float32)

    # Deterministic synthetic parameters (shapes from EntitySelector.__init__):
    w_pre = 0.1 * jax.random.normal(ks[3], (L, H, H), jnp.float32)   # Linear weight (out,in)
    b_pre = 0.1 * jax.random.normal(ks[4], (L, H), jnp.float32)      # Linear bias
    a_pre = jnp.full((L, H), 0.25, jnp.float32)                      # PReLU default slope
    w_bil = 0.1 * jax.random.normal(ks[5], (2 * S, H), jnp.float32)  # nn.Bilinear weight[0]

    prepared = prepare_entity_selector_params(w_pre, b_pre, a_pre, w_bil)

    # 1) Time-stacked call: all T steps in one pallas_call (launch amortized).
    sel, dist, acts = jax.block_until_ready(
        entity_selector(hidden, entities, keys_in, None, prepared))
    # 2) Single-step call with the original per-step shapes (B=2).
    sel0, dist0, acts0 = jax.block_until_ready(
        entity_selector(hidden[0], entities[0], keys_in[0], None, prepared))

    # Pure-JAX reference (mirrors the PyTorch forward exactly).
    hp = jax.lax.Precision.HIGHEST
    x = hidden
    for i in range(L):
        y = jnp.einsum('tbh,oh->tbo', x, w_pre[i], precision=hp) + b_pre[i]
        x = jnp.maximum(y, 0.0) + a_pre[i] * jnp.minimum(y, 0.0)
    cat = jnp.concatenate([entities, keys_in], axis=-1)              # (T,B,E,2S)
    acts_ref = jnp.einsum('tbei,ij,tbj->tbe', cat, w_bil, x, precision=hp)
    dist_ref = jax.nn.sigmoid(acts_ref)
    sel_ref = jnp.einsum('tbe,tbes->tbs', dist_ref, entities, precision=hp)

    assert sel.shape == (T, B, S) and dist.shape == (T, B, E) and acts.shape == (T, B, E)
    assert jnp.allclose(sel, sel_ref, atol=5e-3, rtol=5e-3)
    assert jnp.allclose(dist, dist_ref, atol=5e-3, rtol=5e-3)
    assert jnp.allclose(acts, acts_ref, atol=5e-3, rtol=5e-3)
    assert jnp.allclose(sel0, sel_ref[0], atol=5e-3, rtol=5e-3)
    assert jnp.allclose(dist0, dist_ref[0], atol=5e-3, rtol=5e-3)
    assert jnp.allclose(acts0, acts_ref[0], atol=5e-3, rtol=5e-3)
    print("KERNEL_OK")
</pallas_src>

<mosaic_0001>
module attributes {stable_mosaic.version = 11 : i64} {
  func.func @entity_selector_kernel(%arg0: i32, %arg1: memref<40x128xf32, #tpu.memory_space<vmem>>, %arg2: memref<8x8x128xf32, #tpu.memory_space<vmem>>, %arg3: memref<8x8x128xf32, #tpu.memory_space<vmem>>, %arg4: memref<96x40xf32, #tpu.memory_space<vmem>>, %arg5: memref<40x2xf32, #tpu.memory_space<vmem>>, %arg6: memref<24x128xf32, #tpu.memory_space<vmem>>) attributes {dimension_semantics = [#tpu.dimension_semantics<parallel>], iteration_bounds = array<i64: 1>, scalar_prefetch = 0 : i64, scratch_operands = 0 : i64, tpu.core_type = #tpu.core_type<tc>, window_params = [{transform_indices = @transform_0, window_bounds = array<i64: 40, 128>}, {transform_indices = @transform_1, window_bounds = array<i64: 8, 8, 128>}, {transform_indices = @transform_2, window_bounds = array<i64: 8, 8, 128>}, {pipeline_mode = #tpu.pipeline_mode<synchronous>, transform_indices = @transform_3, window_bounds = array<i64: 96, 40>}, {pipeline_mode = #tpu.pipeline_mode<synchronous>, transform_indices = @transform_4, window_bounds = array<i64: 40, 2>}, {transform_indices = @transform_5, window_bounds = array<i64: 24, 128>}]} {
    %c0 = arith.constant 0 : index
    %c0_0 = arith.constant 0 : index
    %0 = vector.load %arg1[%c0, %c0_0] : memref<40x128xf32, #tpu.memory_space<vmem>>, vector<40x128xf32>
    %c0_1 = arith.constant 0 : index
    %c0_2 = arith.constant 0 : index
    %1 = vector.load %arg4[%c0_1, %c0_2] : memref<96x40xf32, #tpu.memory_space<vmem>>, vector<40x40xf32>
    %c0_3 = arith.constant 0 : index
    %c0_4 = arith.constant 0 : index
    %2 = vector.load %arg5[%c0_3, %c0_4] : memref<40x2xf32, #tpu.memory_space<vmem>>, vector<40x1xf32>
    %cst = arith.constant dense<0.000000e+00> : vector<40x128xf32>
    %3 = tpu.matmul %1, %0, %cst {dimension_numbers = #tpu.dot_dimension_numbers<[1], [0], [0], [1], [0, 0, 1, 1], [], []>} : vector<40x40xf32>, vector<40x128xf32>, vector<40x128xf32> -> vector<40x128xf32>
    %cst_5 = arith.constant 0.000000e+00 : f32
    %4 = vector.broadcast %cst_5 : f32 to vector<40x128xf32>
    %5 = arith.maximumf %3, %4 : vector<40x128xf32>
    %cst_6 = arith.constant 0.000000e+00 : f32
    %6 = vector.broadcast %cst_6 : f32 to vector<40x128xf32>
    %7 = arith.minimumf %3, %6 : vector<40x128xf32>
    %8 = vector.broadcast %2 : vector<40x1xf32> to vector<40x128xf32>
    %9 = arith.mulf %8, %7 : vector<40x128xf32>
    %10 = arith.addf %5, %9 : vector<40x128xf32>
    %c40 = arith.constant 40 : index
    %c0_7 = arith.constant 0 : index
    %11 = vector.load %arg4[%c40, %c0_7] : memref<96x40xf32, #tpu.memory_space<vmem>>, vector<40x40xf32>
    %c0_8 = arith.constant 0 : index
    %c1 = arith.constant 1 : index
    %12 = vector.load %arg5[%c0_8, %c1] : memref<40x2xf32, #tpu.memory_space<vmem>>, vector<40x1xf32>
    %cst_9 = arith.constant dense<0.000000e+00> : vector<40x128xf32>
    %13 = tpu.matmul %11, %10, %cst_9 {dimension_numbers = #tpu.dot_dimension_numbers<[1], [0], [0], [1], [0, 0, 1, 1], [], []>} : vector<40x40xf32>, vector<40x128xf32>, vector<40x128xf32> -> vector<40x128xf32>
    %cst_10 = arith.constant 0.000000e+00 : f32
    %14 = vector.broadcast %cst_10 : f32 to vector<40x128xf32>
    %15 = arith.maximumf %13, %14 : vector<40x128xf32>
    %cst_11 = arith.constant 0.000000e+00 : f32
    %16 = vector.broadcast %cst_11 : f32 to vector<40x128xf32>
    %17 = arith.minimumf %13, %16 : vector<40x128xf32>
    %18 = vector.broadcast %12 : vector<40x1xf32> to vector<40x128xf32>
    %19 = arith.mulf %18, %17 : vector<40x128xf32>
    %20 = arith.addf %15, %19 : vector<40x128xf32>
    %c80 = arith.constant 80 : index
    %c0_12 = arith.constant 0 : index
    %21 = vector.load %arg4[%c80, %c0_12] : memref<96x40xf32, #tpu.memory_space<vmem>>, vector<16x40xf32>
    %cst_13 = arith.constant dense<0.000000e+00> : vector<16x128xf32>
    %22 = tpu.matmul %21, %20, %cst_13 {dimension_numbers = #tpu.dot_dimension_numbers<[1], [0], [0], [1], [0, 0, 1, 1], [], []>} : vector<16x40xf32>, vector<40x128xf32>, vector<16x128xf32> -> vector<16x128xf32>
    %c0_14 = arith.constant 0 : index
    %c0_15 = arith.constant 0 : index
    %c0_16 = arith.constant 0 : index
    %23 = vector.load %arg2[%c0_14, %c0_15, %c0_16] : memref<8x8x128xf32, #tpu.memory_space<vmem>>, vector<8x8x128xf32>
    %c0_17 = arith.constant 0 : index
    %c0_18 = arith.constant 0 : index
    %c0_19 = arith.constant 0 : index
    %24 = vector.load %arg3[%c0_17, %c0_18, %c0_19] : memref<8x8x128xf32, #tpu.memory_space<vmem>>, vector<8x8x128xf32>
    %25 = vector.extract_strided_slice %22 {offsets = [0, 0], sizes = [8, 128], strides = [1, 1]} : vector<16x128xf32> to vector<8x128xf32>
    %26 = vector.shape_cast %25 : vector<8x128xf32> to vector<1x8x128xf32>
    %27 = vector.broadcast %26 : vector<1x8x128xf32> to vector<8x8x128xf32>
    %28 = arith.mulf %23, %27 : vector<8x8x128xf32>
    %cst_20 = arith.constant dense<0.000000e+00> : vector<8x128xf32>
    %29 = vector.multi_reduction <add>, %28, %cst_20 [1] : vector<8x8x128xf32> to vector<8x128xf32>
    %30 = vector.extract_strided_slice %22 {offsets = [8, 0], sizes = [8, 128], strides = [1, 1]} : vector<16x128xf32> to vector<8x128xf32>
    %31 = vector.shape_cast %30 : vector<8x128xf32> to vector<1x8x128xf32>
    %32 = vector.broadcast %31 : vector<1x8x128xf32> to vector<8x8x128xf32>
    %33 = arith.mulf %24, %32 : vector<8x8x128xf32>
    %cst_21 = arith.constant dense<0.000000e+00> : vector<8x128xf32>
    %34 = vector.multi_reduction <add>, %33, %cst_21 [1] : vector<8x8x128xf32> to vector<8x128xf32>
    %35 = arith.addf %29, %34 : vector<8x128xf32>
    %cst_22 = arith.constant 0.000000e+00 : f32
    %36 = vector.broadcast %cst_22 : f32 to vector<8x128xf32>
    %37 = arith.subf %36, %35 : vector<8x128xf32>
    %38 = math.exp %37 : vector<8x128xf32>
    %cst_23 = arith.constant 1.000000e+00 : f32
    %39 = vector.broadcast %cst_23 : f32 to vector<8x128xf32>
    %40 = arith.addf %39, %38 : vector<8x128xf32>
    %cst_24 = arith.constant 1.000000e+00 : f32
    %41 = vector.broadcast %cst_24 : f32 to vector<8x128xf32>
    %42 = arith.divf %41, %40 : vector<8x128xf32>
    %43 = vector.shape_cast %42 : vector<8x128xf32> to vector<8x1x128xf32>
    %44 = vector.broadcast %43 : vector<8x1x128xf32> to vector<8x8x128xf32>
    %45 = arith.mulf %23, %44 : vector<8x8x128xf32>
    %cst_25 = arith.constant dense<0.000000e+00> : vector<8x128xf32>
    %46 = vector.multi_reduction <add>, %45, %cst_25 [0] : vector<8x8x128xf32> to vector<8x128xf32>
    %c0_26 = arith.constant 0 : index
    %c0_27 = arith.constant 0 : index
    %47 = vector.load %arg6[%c0_26, %c0_27] : memref<24x128xf32, #tpu.memory_space<vmem>>, vector<8x128xf32>
    tpu.vector_store %arg6[%c0_26, %c0_27], %46 {strides = array<i32>} : memref<24x128xf32, #tpu.memory_space<vmem>>, vector<8x128xf32>,
    %c8 = arith.constant 8 : index
    %c0_28 = arith.constant 0 : index
    %48 = vector.load %arg6[%c8, %c0_28] : memref<24x128xf32, #tpu.memory_space<vmem>>, vector<8x128xf32>
    tpu.vector_store %arg6[%c8, %c0_28], %42 {strides = array<i32>} : memref<24x128xf32, #tpu.memory_space<vmem>>, vector<8x128xf32>,
    %c16 = arith.constant 16 : index
    %c0_29 = arith.constant 0 : index
    %49 = vector.load %arg6[%c16, %c0_29] : memref<24x128xf32, #tpu.memory_space<vmem>>, vector<8x128xf32>
    tpu.vector_store %arg6[%c16, %c0_29], %35 {strides = array<i32>} : memref<24x128xf32, #tpu.memory_space<vmem>>, vector<8x128xf32>,
    return
  }
  func.func @transform_0(%arg0: i32) -> (i32, i32) {
    %c0_i32 = arith.constant 0 : i32
    %c0_i32_0 = arith.constant 0 : i32
    return %c0_i32, %arg0 : i32, i32
  }
  func.func @transform_1(%arg0: i32) -> (i32, i32, i32) {
    %c0_i32 = arith.constant 0 : i32
    %c0_i32_0 = arith.constant 0 : i32
    %c0_i32_1 = arith.constant 0 : i32
    return %c0_i32, %c0_i32_0, %arg0 : i32, i32, i32
  }
  func.func @transform_2(%arg0: i32) -> (i32, i32, i32) {
    %c0_i32 = arith.constant 0 : i32
    %c0_i32_0 = arith.constant 0 : i32
    %c0_i32_1 = arith.constant 0 : i32
    return %c0_i32, %c0_i32_0, %arg0 : i32, i32, i32
  }
  func.func @transform_3(%arg0: i32) -> (i32, i32) {
    %c0_i32 = arith.constant 0 : i32
    %c0_i32_0 = arith.constant 0 : i32
    %c0_i32_1 = arith.constant 0 : i32
    return %c0_i32, %c0_i32_0 : i32, i32
  }
  func.func @transform_4(%arg0: i32) -> (i32, i32) {
    %c0_i32 = arith.constant 0 : i32
    %c0_i32_0 = arith.constant 0 : i32
    %c0_i32_1 = arith.constant 0 : i32
    return %c0_i32, %c0_i32_0 : i32, i32
  }
  func.func @transform_5(%arg0: i32) -> (i32, i32) {
    %c0_i32 = arith.constant 0 : i32
    %c0_i32_0 = arith.constant 0 : i32
    return %c0_i32, %arg0 : i32, i32
  }
}

</mosaic_0001>

<bundles_post_ra>
// kernel: tpu_custom_call.1
= control target key start
LH: loop header
LB: loop body
LE: loop exit
PB: predicated region body
PF: predicated region fallthrough
CT: control target
= control target key end

     0   :  { %10 = vsyncpa [#allocation3], 0  ;;  %s1164_s0 = inlined_call_operand.hbm [shape: f32[40,128], index: 0, kind: input, shape index: {}]   ;;  %s1165_s1 = inlined_call_operand.vmem [shape: f32[8,8,128], index: 1, kind: input, shape index: {}]   ;;  %s1166_s2 = inlined_call_operand.vmem [shape: f32[8,8,128], index: 2, kind: input, shape index: {}]   ;;  %s1167_s3 = inlined_call_operand.vmem [shape: f32[96,40], index: 3, kind: input, shape index: {}]   ;;  %s1168_s4 = inlined_call_operand.vmem [shape: f32[40,2], index: 4, kind: input, shape index: {}]   ;;  %s1169_s5 = inlined_call_operand.hbm [shape: f32[24,128], index: 5, kind: output, shape index: {}]  }
   0x1   :  { %11 = vsyncpa [#allocation4], 0  ;;  %s16_s20 = sshll.u32 %s1164_s0, 4  ;;  %s755_s21 = smov [#allocation2]   ;;  %s17_s20 = int_to_ptr.hbm [resolvable:$true] %s16_s20 }
   0x2   :  { %s18_s22 = sshll.u32 %s755_s21, 4  ;;  %s756_s23 = smov 128   ;;  %s19_s22 = int_to_ptr.vmem [resolvable:$true] %s18_s22 }
   0x3   :  { %s757_s24 = smov 8  }
   0x4   :  { %24 = dma.hbm_to_vmem [thread:$0]  %s17_s20, 640, %s19_s22, [#allocation3], %s756_s23, %s756_s23, %s757_s24  }
   0x5   :  { %751 = dma.done.wait [#allocation3], 640  }
   0x6   :  { %752 = vsyncadd [#allocation3], 4294966656  ;;  %v758_v0 = vmov 0   ;;  %v41_v1 = vld [vmem:[#allocation2 + $0x20] sm:$0xff]  ;;  %v40_v2 = vld [vmem:[#allocation2 + $0x18] sm:$0xff]  ;;  %vm52_vm0 = vcmask 326656  }
   0x7   :  { %665 = vset.pattern.permute.xlu0 %v758_v0  ;;  %666 = vset.pattern.permute.xlu1 %v758_v0  ;;  %v39_v3 = vld [vmem:[#allocation2 + $0x10] sm:$0xff]  ;;  %v51_v4 = vld [vmem:[%s1168_s4 + $0x20] sm:$0xff]  ;;  %v38_v6 = vld [vmem:[#allocation2 + $0x8] sm:$0xff]  ;;  %v759_v16 = vmov 1   ;;  %vm580_vm1 = vcmask 1041409   ;;  %vm1172_vm2 = vcmask 1042434  }
   0x8   :  { %667 = vset.pattern.permute.xlu2 %v758_v0  ;;  %79 = vmatpush.msra.mxu0 %v41_v1  ;;  %v49_v5 = vld [vmem:[%s1168_s4 + $0x10] sm:$0xff]  ;;  %v47_v7 = vld [vmem:[%s1168_s4] sm:$0xff]  ;;  %v45_v10 = vld [vmem:[%s1167_s3 + $0x18] sm:$0xff]  ;;  %vm1171_vm3 = vcmask 1043459   ;;  %vm1170_vm4 = vcmask 1044484   ;;  %vm588_vm14 = vcmask 1045509  }
   0x9   :  { %644 = vmatpush.msra.mxu3 %v41_v1  ;;  %132 = vperm.xlu0 %665, %v51_v4   ;;  %v37_v8 = vld [vmem:[#allocation2] sm:$0xff]  ;;  %v50_v11 = vld [vmem:[%s1168_s4 + $0x18] sm:$0xff]  ;;  %v48_v12 = vld [vmem:[%s1168_s4 + $0x8] sm:$0xff]  ;;  %s619_s15 = sshll.u32 %s1169_s5, 4  ;;  %s620_s15 = int_to_ptr.hbm [resolvable:$true] %s619_s15 }
   0xa   :  { %80 = vmatpush.msra.mxu0 %v40_v2  ;;  %122 = vperm.xlu1 %666, %v49_v5   ;;  %v42_v9 = vld [vmem:[%s1167_s3] sm:$0xff]  ;;  %v43_v13 = vld [vmem:[%s1167_s3 + $0x8] sm:$0xff]  ;;  %v44_v15 = vld [vmem:[%s1167_s3 + $0x10] sm:$0xff] }
   0xb   :  { %645 = vmatpush.msra.mxu3 %v40_v2  ;;  %112 = vperm.xlu2 %667, %v47_v7   ;;  %v46_v14 = vld [vmem:[%s1167_s3 + $0x20] sm:$0xff]  ;;  %v145_v48 = vld [vmem:[%s1167_s3 + $0x28] sm:$0xff]  ;;  %v146_v50 = vld [vmem:[%s1167_s3 + $0x30] sm:$0xff] }
   0xc   :  { %81 = vmatpush.msra.mxu0 %v39_v3  ;;  %v148_v47 = vld [vmem:[%s1167_s3 + $0x40] sm:$0xff]  ;;  %v149_v49 = vld [vmem:[%s1167_s3 + $0x48] sm:$0xff]  ;;  %v147_v51 = vld [vmem:[%s1167_s3 + $0x38] sm:$0xff] }
   0xd   :  { %646 = vmatpush.msra.mxu3 %v39_v3 }
   0xe   :  { %82 = vmatpush.msra.mxu0 %v38_v6 }
   0xf   :  { %647 = vmatpush.msra.mxu3 %v38_v6 }
  0x10   :  { %83 = vmatpush.msra.mxu0 %v37_v8 }
  0x11   :  { %648 = vmatpush.msra.mxu3 %v37_v8  ;;  %632 = vmatmul.msk.f32.vlgmr.msra.gmra.mxu0 %vm52_vm0, %v42_v9 }
  0x12   :  { %635 = vmatmul.msk.f32.vlgmr.msra.gmra.mxu3 %vm52_vm0, %v45_v10  ;;  %127 = vperm.xlu0 %665, %v50_v11  }
  0x13   :  { %117 = vperm.xlu1 %666, %v48_v12   ;;  %668 = vset.pattern.permute.xlu2 %v759_v16 }
  0x14   :  { %224 = vperm.xlu2 %668, %v51_v4  }
  0x19   :  { %633 = vmatmul.msk.f32.gmra.mxu0 %vm52_vm0, %v43_v13 }
  0x1a   :  { %636 = vmatmul.msk.f32.gmra.mxu3 %vm52_vm0, %v46_v14  ;;  %669 = vset.pattern.permute.xlu0 %v759_v16 }
  0x1b   :  { %670 = vset.pattern.permute.xlu1 %v759_v16  ;;  %220 = vperm.xlu0 %669, %v50_v11  }
  0x1c   :  { %216 = vperm.xlu1 %670, %v49_v5   ;;  %212 = vperm.xlu2 %668, %v48_v12  }
  0x21   :  { %634 = vmatmul.msk.f32.gmra.mxu0 %vm52_vm0, %v44_v15 }
  0x24   :  { %208 = vperm.xlu1 %670, %v47_v7  }
  0x65   :  { %v113_v38 = vpop.permute.xlu2 %112 }
  0x6e   :  { %v225_v54 = vpop.permute.xlu2 %224 }
  0x76   :  { %v213_v4 = vpop.permute.xlu2 %212 }
  0x7b   :  { %v133_v18 = vpop.permute.xlu0 %132 }
  0x7c   :  { %v123_v20 = vpop.permute.xlu1 %122 }
  0x84   :  { %v128_v23 = vpop.permute.xlu0 %127 }
  0x85   :  { %v118_v33 = vpop.permute.xlu1 %117 }
  0x8d   :  { %v221_v58 = vpop.permute.xlu0 %220 }
  0x8e   :  { %v85_v17 = vpop.f32.mrf.mxu0  ;;  %v217_v56 = vpop.permute.xlu1 %216 }
  0x8f   :  { %v105_v32 = vmin.f32 %v85_v17, 0.0  ;;  %v100_v42 = vmax.f32 %v85_v17, 0.0 }
  0x91   :  { %v135_v43 = vmul.f32 %v113_v38, %v105_v32 }
  0x93   :  { %v140_v46 = vadd.f32 %v135_v43, %v100_v42  ;;  %v278_v43 = vld [vmem:[%s1166_s2 + $0x10] sm:$0xff] }
  0x95   :  { %v94_v19 = vpop.f32.mrf.mxu3 }
  0x96   :  { %v88_v21 = vpop.f32.mrf.mxu0  ;;  %v108_v22 = vmin.f32 %v94_v19, 0.0  ;;  %v103_v34 = vmax.f32 %v94_v19, 0.0  ;;  %v209_v9 = vpop.permute.xlu1 %208  ;;  %v238_v19 = vld [vmem:[%s1167_s3 + $0x58] sm:$0xff] }
  0x97   :  { %v106_v28 = vmin.f32 %v88_v21, 0.0  ;;  %v101_v39 = vmax.f32 %v88_v21, 0.0  ;;  %v868_v21 = vld [vmem:[%s1165_s1 + $0x8] sm:$0xff] }
  0x98   :  { %v138_v26 = vmul.f32 %v128_v23, %v108_v22  ;;  %v873_v22 = vld [vmem:[%s1165_s1 + $0x10] sm:$0xff]  ;;  %v878_v23 = vld [vmem:[%s1165_s1 + $0x18] sm:$0xff] }
  0x99   :  { %v136_v40 = vmul.f32 %v118_v33, %v106_v28 }
  0x9a   :  { %v143_v41 = vadd.f32 %v138_v26, %v103_v34  ;;  %v893_v26 = vld [vmem:[%s1165_s1 + $0x30] sm:$0xff]  ;;  %v277_v34 = vld [vmem:[%s1166_s2 + $0x8] sm:$0xff] }
  0x9b   :  { %v141_v45 = vadd.f32 %v136_v40, %v101_v39 }
  0x9d   :  { %v97_v24 = vpop.f32.mrf.mxu3 }
  0x9e   :  { %v109_v25 = vmin.f32 %v97_v24, 0.0  ;;  %v91_v27 = vpop.f32.mrf.mxu0  ;;  %v104_v29 = vmax.f32 %v97_v24, 0.0  ;;  %v883_v24 = vld [vmem:[%s1165_s1 + $0x20] sm:$0xff] }
  0x9f   :  { %v107_v30 = vmin.f32 %v91_v27, 0.0  ;;  %v102_v35 = vmax.f32 %v91_v27, 0.0  ;;  %v276_v27 = vld [vmem:[%s1166_s2] sm:$0xff] }
  0xa0   :  { %v139_v31 = vmul.f32 %v133_v18, %v109_v25  ;;  %v237_v18 = vld [vmem:[%s1167_s3 + $0x50] sm:$0xff]  ;;  %v888_v25 = vld [vmem:[%s1165_s1 + $0x28] sm:$0xff] }
  0xa1   :  { %v137_v36 = vmul.f32 %v123_v20, %v107_v30  ;;  %v863_v20 = vld [vmem:[%s1165_s1] sm:$0xff] }
  0xa2   :  { %v144_v37 = vadd.f32 %v139_v31, %v104_v29 }
  0xa3   :  { %v142_v44 = vadd.f32 %v137_v36, %v102_v35 }
  0xa4   :  { %176 = vmatpush.msra.mxu1 %v144_v37  ;;  %649 = vmatpush.msra.mxu2 %v144_v37 }
  0xa6   :  { %177 = vmatpush.msra.mxu1 %v143_v41  ;;  %650 = vmatpush.msra.mxu2 %v143_v41 }
  0xa8   :  { %178 = vmatpush.msra.mxu1 %v142_v44  ;;  %651 = vmatpush.msra.mxu2 %v142_v44 }
  0xaa   :  { %179 = vmatpush.msra.mxu1 %v141_v45  ;;  %652 = vmatpush.msra.mxu2 %v141_v45 }
  0xac   :  { %180 = vmatpush.msra.mxu1 %v140_v46  ;;  %653 = vmatpush.msra.mxu2 %v140_v46 }
  0xad   :  { %640 = vmatmul.msk.f32.vlgmr.msra.gmra.mxu2 %vm52_vm0, %v148_v47  ;;  %637 = vmatmul.msk.f32.vlgmr.msra.gmra.mxu1 %vm52_vm0, %v145_v48 }
  0xb5   :  { %641 = vmatmul.msk.f32.gmra.mxu2 %vm52_vm0, %v149_v49  ;;  %638 = vmatmul.msk.f32.gmra.mxu1 %vm52_vm0, %v146_v50 }
  0xbd   :  { %639 = vmatmul.msk.f32.gmra.mxu1 %vm52_vm0, %v147_v51 }
 0x12a   :  { %v182_v52 = vpop.f32.mrf.mxu1 }
 0x12b   :  { %v202_v3 = vmin.f32 %v182_v52, 0.0  ;;  %v197_v13 = vmax.f32 %v182_v52, 0.0  ;;  %v279_v52 = vld [vmem:[%s1166_s2 + $0x18] sm:$0xff] }
 0x12d   :  { %v227_v14 = vmul.f32 %v209_v9, %v202_v3 }
 0x12f   :  { %v232_v17 = vadd.f32 %v227_v14, %v197_v13 }
 0x130   :  { %v191_v53 = vpop.f32.mrf.mxu2 }
 0x131   :  { %v205_v57 = vmin.f32 %v191_v53, 0.0  ;;  %v200_v5 = vmax.f32 %v191_v53, 0.0 }
 0x132   :  { %v185_v55 = vpop.f32.mrf.mxu1 }
 0x133   :  { %v230_v61 = vmul.f32 %v221_v58, %v205_v57  ;;  %v203_v63 = vmin.f32 %v185_v55, 0.0  ;;  %v198_v10 = vmax.f32 %v185_v55, 0.0 }
 0x135   :  { %v228_v11 = vmul.f32 %v213_v4, %v203_v63  ;;  %v235_v12 = vadd.f32 %v230_v61, %v200_v5  ;;  %v280_v61 = vld [vmem:[%s1166_s2 + $0x20] sm:$0xff] }
 0x137   :  { %v233_v16 = vadd.f32 %v228_v11, %v198_v10 }
 0x138   :  { %v194_v59 = vpop.f32.mrf.mxu2 }
 0x139   :  { %v206_v60 = vmin.f32 %v194_v59, 0.0  ;;  %v201_v0 = vmax.f32 %v194_v59, 0.0 }
 0x13a   :  { %v188_v62 = vpop.f32.mrf.mxu1 }
 0x13b   :  { %v204_v1 = vmin.f32 %v188_v62, 0.0  ;;  %v231_v2 = vmul.f32 %v225_v54, %v206_v60  ;;  %v199_v6 = vmax.f32 %v188_v62, 0.0 }
 0x13d   :  { %v229_v7 = vmul.f32 %v217_v56, %v204_v1  ;;  %v236_v8 = vadd.f32 %v231_v2, %v201_v0 }
 0x13f   :  { %256 = vmatpush.msrb.mxu2 %v236_v8  ;;  %654 = vmatpush.msrb.mxu3 %v236_v8  ;;  %v234_v15 = vadd.f32 %v229_v7, %v199_v6  ;;  %v281_v6 = vld [vmem:[%s1166_s2 + $0x28] sm:$0xff]  ;;  %v282_v7 = vld [vmem:[%s1166_s2 + $0x30] sm:$0xff] }
 0x141   :  { %257 = vmatpush.msrb.mxu2 %v235_v12  ;;  %655 = vmatpush.msrb.mxu3 %v235_v12 }
 0x143   :  { %258 = vmatpush.msrb.mxu2 %v234_v15  ;;  %656 = vmatpush.msrb.mxu3 %v234_v15 }
 0x145   :  { %259 = vmatpush.msrb.mxu2 %v233_v16  ;;  %657 = vmatpush.msrb.mxu3 %v233_v16  ;;  %v283_v16 = vld [vmem:[%s1166_s2 + $0x38] sm:$0xff] }
 0x147   :  { %260 = vmatpush.msrb.mxu2 %v232_v17  ;;  %658 = vmatpush.msrb.mxu3 %v232_v17 }
 0x148   :  { %642 = vmatmul.msk.f32.vlgmr.msrb.gmra.mxu2 %vm52_vm0, %v237_v18  ;;  %643 = vmatmul.msk.f32.vlgmr.msrb.gmra.mxu3 %vm52_vm0, %v238_v19 }
 0x1cb   :  { %v898_v28 = vpop.f32.mrf.mxu2  ;;  %v265_v29 = vpop.f32.mrf.mxu3 }
 0x1cc   :  { %v284_v30 = vmul.f32 %v863_v20, %v898_v28  ;;  %v285_v31 = vmul.f32 %v868_v21, %v898_v28  ;;  %v286_v32 = vmul.f32 %v873_v22, %v898_v28  ;;  %v287_v33 = vmul.f32 %v878_v23, %v898_v28 }
 0x1cd   :  { %v288_v35 = vmul.f32 %v883_v24, %v898_v28  ;;  %v289_v36 = vmul.f32 %v888_v25, %v898_v28  ;;  %v290_v37 = vmul.f32 %v893_v26, %v898_v28  ;;  %v340_v38 = vmul.f32 %v276_v27, %v265_v29 }
 0x1ce   :  { %v292_v39 = vrot.slane %v284_v30, 4  ;;  %v298_v40 = vrot.slane %v285_v31, 4  ;;  %v304_v41 = vrot.slane %v286_v32, 4  ;;  %v310_v42 = vrot.slane %v287_v33, 4 }
 0x1cf   :  { %v316_v44 = vrot.slane %v288_v35, 4  ;;  %v322_v45 = vrot.slane %v289_v36, 4  ;;  %v328_v46 = vrot.slane %v290_v37, 4  ;;  %v341_v47 = vmul.f32 %v277_v34, %v265_v29 }
 0x1d0   :  { %v293_v48 = vadd.f32 %v292_v39, %v284_v30  ;;  %v299_v49 = vadd.f32 %v298_v40, %v285_v31  ;;  %v305_v50 = vadd.f32 %v304_v41, %v286_v32  ;;  %v311_v51 = vadd.f32 %v310_v42, %v287_v33 }
 0x1d1   :  { %v317_v53 = vadd.f32 %v316_v44, %v288_v35  ;;  %v323_v54 = vadd.f32 %v322_v45, %v289_v36  ;;  %v329_v55 = vadd.f32 %v328_v46, %v290_v37  ;;  %v342_v56 = vmul.f32 %v278_v43, %v265_v29 }
 0x1d2   :  { %v294_v57 = vrot.slane %v293_v48, 2  ;;  %v300_v58 = vrot.slane %v299_v49, 2  ;;  %v306_v59 = vrot.slane %v305_v50, 2  ;;  %v312_v60 = vrot.slane %v311_v51, 2 }
 0x1d3   :  { %v318_v62 = vrot.slane %v317_v53, 2  ;;  %v324_v63 = vrot.slane %v323_v54, 2  ;;  %v330_v0 = vrot.slane %v329_v55, 2  ;;  %v343_v1 = vmul.f32 %v279_v52, %v265_v29 }
 0x1d4   :  { %v295_v2 = vadd.f32 %v294_v57, %v293_v48  ;;  %v301_v3 = vadd.f32 %v300_v58, %v299_v49  ;;  %v307_v4 = vadd.f32 %v306_v59, %v305_v50  ;;  %v313_v5 = vadd.f32 %v312_v60, %v311_v51  ;;  %v940_v60 = vld [vmem:[%s1165_s1 + $0x38] sm:$0xff]  ;;  %s760_s1 = smov [#allocation5]  }
 0x1d5   :  { %v319_v8 = vadd.f32 %v318_v62, %v317_v53  ;;  %v325_v9 = vadd.f32 %v324_v63, %v323_v54  ;;  %v932_v10 = vadd.f32 %v330_v0, %v329_v55  ;;  %v344_v11 = vmul.f32 %v280_v61, %v265_v29  ;;  %s617_s13 = sshll.u32 %s760_s1, 4  ;;  %s618_s13 = int_to_ptr.vmem [resolvable:$true] %s617_s13 }
 0x1d6   :  { %v296_v12 = vrot.slane %v295_v2, 1  ;;  %v302_v13 = vrot.slane %v301_v3, 1  ;;  %v308_v14 = vrot.slane %v307_v4, 1  ;;  %v314_v15 = vrot.slane %v313_v5, 1 }
 0x1d7   :  { %v320_v17 = vrot.slane %v319_v8, 1  ;;  %v326_v18 = vrot.slane %v325_v9, 1  ;;  %v345_v19 = vmul.f32 %v281_v6, %v265_v29  ;;  %v346_v27 = vmul.f32 %v282_v7, %v265_v29 }
 0x1d8   :  { %v297_v30 = vadd.f32 %v296_v12, %v295_v2  ;;  %v303_v31 = vadd.f32 %v302_v13, %v301_v3  ;;  %v309_v32 = vadd.f32 %v308_v14, %v307_v4  ;;  %v315_v33 = vadd.f32 %v314_v15, %v313_v5 }
 0x1d9   :  { %v321_v34 = vadd.f32 %v320_v17, %v319_v8  ;;  %v347_v35 = vmul.f32 %v283_v16, %v265_v29  ;;  %v348_v36 = vrot.slane %v340_v38, 4  ;;  %v354_v37 = vrot.slane %v341_v47, 4 }
 0x1da   :  { %v360_v39 = vrot.slane %v342_v56, 4  ;;  %v366_v40 = vrot.slane %v343_v1, 4  ;;  %v372_v41 = vrot.slane %v344_v11, 4  ;;  %v378_v42 = vrot.slane %v345_v19, 4 }
 0x1db   :  { %v349_v43 = vadd.f32 %v348_v36, %v340_v38  ;;  %v355_v44 = vadd.f32 %v354_v37, %v341_v47  ;;  %v384_v45 = vrot.slane %v346_v27, 4  ;;  %v390_v46 = vrot.slane %v347_v35, 4 }
 0x1dc   :  { %v361_v48 = vadd.f32 %v360_v39, %v342_v56  ;;  %v367_v49 = vadd.f32 %v366_v40, %v343_v1  ;;  %v373_v50 = vadd.f32 %v372_v41, %v344_v11  ;;  %v379_v51 = vadd.f32 %v378_v42, %v345_v19 }
 0x1dd   :  { %v350_v52 = vrot.slane %v349_v43, 2  ;;  %v356_v53 = vrot.slane %v355_v44, 2  ;;  %v385_v54 = vadd.f32 %v384_v45, %v346_v27  ;;  %v391_v55 = vadd.f32 %v390_v46, %v347_v35 }
 0x1de   :  { %v362_v57 = vrot.slane %v361_v48, 2  ;;  %v368_v29 = vrot.slane %v367_v49, 2  ;;  %v374_v58 = vrot.slane %v373_v50, 2  ;;  %v380_v59 = vrot.slane %v379_v51, 2 }
 0x1df   :  { %v351_v38 = vadd.f32 %v350_v52, %v349_v43  ;;  %v357_v47 = vadd.f32 %v356_v53, %v355_v44  ;;  %v386_v61 = vrot.slane %v385_v54, 2  ;;  %v392_v56 = vrot.slane %v391_v55, 2 }
 0x1e0   :  { %v363_v62 = vadd.f32 %v362_v57, %v361_v48  ;;  %v369_v63 = vadd.f32 %v368_v29, %v367_v49  ;;  %v375_v0 = vadd.f32 %v374_v58, %v373_v50  ;;  %v381_v1 = vadd.f32 %v380_v59, %v379_v51 }
 0x1e1   :  { %v352_v2 = vrot.slane %v351_v38, 1  ;;  %v358_v3 = vrot.slane %v357_v47, 1  ;;  %v387_v4 = vadd.f32 %v386_v61, %v385_v54  ;;  %v291_v5 = vmul.f32 %v940_v60, %v898_v28 }
 0x1e2   :  { %v364_v6 = vrot.slane %v363_v62, 1  ;;  %v370_v7 = vrot.slane %v369_v63, 1  ;;  %v376_v8 = vrot.slane %v375_v0, 1  ;;  %v382_v11 = vrot.slane %v381_v1, 1 }
 0x1e3   :  { %v353_v12 = vadd.f32 %v352_v2, %v351_v38  ;;  %v359_v13 = vadd.f32 %v358_v3, %v357_v47  ;;  %v327_v14 = vadd.f32 %v326_v18, %v325_v9  ;;  %v332_v15 = vrot.slane %v932_v10, 1 }
 0x1e4   :  { %v365_v16 = vadd.f32 %v364_v6, %v363_v62  ;;  %v371_v17 = vadd.f32 %v370_v7, %v369_v63  ;;  %v377_v19 = vadd.f32 %v376_v8, %v375_v0  ;;  %v334_v27 = vrot.slane %v291_v5, 4 }
 0x1e5   :  { %v396_v35 = vadd.f32 %v353_v12, %v297_v30  ;;  %v397_v36 = vadd.f32 %v359_v13, %v303_v31  ;;  %v333_v37 = vadd.f32 %v332_v15, %v932_v10  ;;  %v383_v39 = vadd.f32 %v382_v11, %v381_v1 }
 0x1e6   :  { %v398_v40 = vadd.f32 %v365_v16, %v309_v32  ;;  %v335_v28 = vadd.f32 %v334_v27, %v291_v5  ;;  %v388_v41 = vrot.slane %v387_v4, 1  ;;  %v393_v42 = vadd.f32 %v392_v56, %v391_v55 }
 0x1e7   :  { %v404_v43 = vsub.f32 0.0, %v396_v35  ;;  %v405_v44 = vsub.f32 0.0, %v397_v36  ;;  %v399_v45 = vadd.f32 %v371_v17, %v315_v33  ;;  %v400_v46 = vadd.f32 %v377_v19, %v321_v34 }
 0x1e8   :  { %v406_v9 = vsub.f32 0.0, %v398_v40  ;;  %v336_v18 = vrot.slane %v335_v28, 2  ;;  %v389_v48 = vadd.f32 %v388_v41, %v387_v4  ;;  %v394_v49 = vrot.slane %v393_v42, 1 }
 0x1e9   :  { %v412_v50 = vmul.f32 1.442695, %v404_v43  ;;  %v414_v51 = vmul.f32 1.442695, %v405_v44  ;;  %v946_v52 = vadd.f32 %v383_v39, %v327_v14  ;;  %v407_v30 = vsub.f32 0.0, %v399_v45 }
 0x1ea   :  { %v416_v31 = vmul.f32 1.442695, %v406_v9  ;;  %v337_v10 = vadd.f32 %v336_v18, %v335_v28  ;;  %v948_v53 = vadd.f32 %v389_v48, %v333_v37  ;;  %v408_v32 = vsub.f32 0.0, %v400_v46 }
 0x1eb   :  { %671 = vpow2.f32 %v412_v50  ;;  %v409_v54 = vsub.f32 0.0, %v946_v52  ;;  %v418_v55 = vmul.f32 1.442695, %v407_v30  ;;  %v395_v34 = vadd.f32 %v394_v49, %v393_v42 }
 0x1ec   :  { %673 = vpow2.f32 %v414_v51  ;;  %v338_v33 = vrot.slane %v337_v10, 1  ;;  %v410_v57 = vsub.f32 0.0, %v948_v53  ;;  %v420_v29 = vmul.f32 1.442695, %v408_v32 }
 0x1ed   :  { %675 = vpow2.f32 %v416_v31  ;;  %v422_v59 = vmul.f32 1.442695, %v409_v54  ;;  %v604_v61 = vsel %vm580_vm1, %v397_v36, %v396_v35 }
 0x1ee   :  { %v339_v58 = vadd.f32 %v338_v33, %v337_v10  ;;  %677 = vpow2.f32 %v418_v55  ;;  %v424_v38 = vmul.f32 1.442695, %v410_v57  ;;  %v605_v3 = vsel %vm1172_vm2, %v398_v40, %v604_v61 }
 0x1ef   :  { %679 = vpow2.f32 %v420_v29  ;;  %v606_v11 = vsel %vm1171_vm3, %v399_v45, %v605_v3 }
 0x1f0   :  { %v952_v47 = vadd.f32 %v395_v34, %v339_v58  ;;  %681 = vpow2.f32 %v422_v59  ;;  %v974_v16 = vsel %vm1170_vm4, %v400_v46, %v606_v11 }
 0x1f1   :  { %v672_v56 = vpop.eup %671  ;;  %683 = vpow2.f32 %v424_v38 }
 0x1f2   :  { %v674_v62 = vpop.eup %673  ;;  %v955_v63 = vadd.f32 1.0, %v672_v56  ;;  %v411_v2 = vsub.f32 0.0, %v952_v47 }
 0x1f3   :  { %v676_v0 = vpop.eup %675  ;;  %v957_v1 = vadd.f32 1.0, %v674_v62 }
 0x1f4   :  { %v678_v4 = vpop.eup %677  ;;  %v961_v5 = vadd.f32 1.0, %v676_v0  ;;  %685 = vrcp.f32 %v955_v63  ;;  %v426_v12 = vmul.f32 1.442695, %v411_v2  ;;  %v447_v14 = vand.u32 2147483648, %v955_v63 }
 0x1f5   :  { %v680_v6 = vpop.eup %679  ;;  %687 = vrcp.f32 %v957_v1  ;;  %v965_v7 = vadd.f32 1.0, %v678_v4  ;;  %vm441_vm5 = vweird.f32 %v955_v63  ;;  %v445_v19 = vand.u32 2147483647, %v955_v63 }
 0x1f6   :  { %689 = vrcp.f32 %v961_v5  ;;  %v968_v8 = vadd.f32 1.0, %v680_v6  ;;  %v682_v13 = vpop.eup %681  ;;  %v462_v27 = vand.u32 2147483648, %v957_v1  ;;  %v460_v39 = vand.u32 2147483647, %v957_v1 }
 0x1f7   :  { %v684_v15 = vpop.eup %683  ;;  %691 = vrcp.f32 %v965_v7  ;;  %v984_v36 = vadd.f32 1.0, %v682_v13  ;;  %v448_v41 = vor.u32 1.1754944e-38, %v447_v14  ;;  %vm456_vm6 = vweird.f32 %v957_v1 }
 0x1f8   :  { %693 = vrcp.f32 %v968_v8  ;;  %v991_v28 = vadd.f32 1.0, %v684_v15  ;;  %vm471_vm7 = vweird.f32 %v961_v5  ;;  %v475_v45 = vand.u32 2147483647, %v961_v5 }
 0x1f9   :  { %695 = vpow2.f32 %v426_v12  ;;  %v463_v9 = vor.u32 1.1754944e-38, %v462_v27  ;;  %v477_v18 = vand.u32 2147483648, %v961_v5  ;;  %vm486_vm8 = vweird.f32 %v965_v7 }
 0x1fa   :  { %v976_v17 = vpop.eup %685  ;;  %vm1005_vm9 = vcmp.eq.f32.partialorder %v445_v19, 8.507059e+37  ;;  %vm1009_vm10 = vcmp.eq.f32.partialorder %v460_v39, 8.507059e+37  ;;  %v490_v31 = vand.u32 2147483647, %v965_v7  ;;  %697 = vrcp.f32 %v984_v36 }
 0x1fb   :  { %v982_v35 = vpop.eup %687  ;;  %v437_v37 = vmul.f32 %v976_v17, %v955_v63  ;;  %vm442_vm11 = vweird.f32 %v976_v17  ;;  %v492_v55 = vand.u32 2147483648, %v965_v7  ;;  %vm1028_vm13 = vcmp.eq.f32.partialorder %v475_v45, 8.507059e+37 }
 0x1fc   :  { %v989_v40 = vpop.eup %689  ;;  %v452_v42 = vmul.f32 %v982_v35, %v957_v1  ;;  %vm457_vm12 = vweird.f32 %v982_v35  ;;  %v478_v38 = vor.u32 1.1754944e-38, %v477_v18  ;;  %vm1034_vm15 = vmor %vm441_vm5, %vm442_vm11  ;;  %vm1040_vm4 = vcmp.eq.f32.partialorder %v490_v31, 8.507059e+37 }
 0x1fd   :  { %v438_v43 = vsub.f32 1.0, %v437_v37  ;;  %v467_v44 = vmul.f32 %v989_v40, %v961_v5  ;;  %v1002_v48 = vpop.eup %691  ;;  %vm472_vm0 = vweird.f32 %v989_v40  ;;  %vm501_vm3 = vweird.f32 %v968_v8  ;;  %vm1051_vm5 = vmor %vm456_vm6, %vm457_vm12 }
 0x1fe   :  { %v453_v46 = vsub.f32 1.0, %v452_v42  ;;  %v1015_v10 = vpop.eup %693  ;;  %v482_v54 = vmul.f32 %v1002_v48, %v965_v7  ;;  %vm487_vm11 = vweird.f32 %v1002_v48  ;;  %v505_v6 = vand.u32 2147483647, %v968_v8  ;;  %vm1070_vm2 = vmor %vm471_vm7, %vm472_vm0 }
 0x1ff   :  { %v439_v49 = vmul.f32 %v976_v17, %v438_v43  ;;  %v468_v30 = vsub.f32 1.0, %v467_v44  ;;  %v696_v33 = vpop.eup %695  ;;  %v497_v29 = vmul.f32 %v1015_v10, %v968_v8  ;;  %vm502_vm6 = vweird.f32 %v1015_v10  ;;  %vm1085_vm7 = vmor %vm486_vm8, %vm487_vm11 }
 0x200   :  { %v454_v32 = vmul.f32 %v982_v35, %v453_v46  ;;  %v483_v61 = vsub.f32 1.0, %v482_v54  ;;  %v1045_v3 = vadd.f32 1.0, %v696_v33  ;;  %v698_v11 = vpop.eup %697  ;;  %vm590_vm12 = vcmask 1046534  }
 0x201   :  { %v440_v34 = vadd.f32 %v976_v17, %v439_v49  ;;  %v469_v57 = vmul.f32 %v989_v40, %v468_v30  ;;  %v498_v2 = vsub.f32 1.0, %v497_v29  ;;  %v512_v19 = vmul.f32 %v698_v11, %v984_v36 }
 0x202   :  { %v455_v58 = vadd.f32 %v982_v35, %v454_v32  ;;  %v484_v4 = vmul.f32 %v1002_v48, %v483_v61  ;;  %v520_v27 = vand.u32 2147483647, %v984_v36  ;;  %v522_v39 = vand.u32 2147483648, %v984_v36 }
 0x203   :  { %v470_v62 = vadd.f32 %v989_v40, %v469_v57  ;;  %v444_v12 = vsel %vm1034_vm15, %v976_v17, %v440_v34  ;;  %v499_v1 = vmul.f32 %v1015_v10, %v498_v2  ;;  %v507_v17 = vand.u32 2147483648, %v968_v8 }
 0x204   :  { %v459_v13 = vsel %vm1051_vm5, %v982_v35, %v455_v58  ;;  %v485_v15 = vadd.f32 %v1002_v48, %v484_v4  ;;  %vm592_vm15 = vcmask 1047559   ;;  %699 = vrcp.f32 %v991_v28 }
 0x205   :  { %v474_v35 = vsel %vm1070_vm2, %v989_v40, %v470_v62  ;;  %v500_v37 = vadd.f32 %v1015_v10, %v499_v1  ;;  %v449_v42 = vsel %vm1005_vm9, %v448_v41, %v444_v12  ;;  %v464_v40 = vsel %vm1009_vm10, %v463_v9, %v459_v13  ;;  %vm1100_vm2 = vmor %vm501_vm3, %vm502_vm6 }
 0x206   :  { %v513_v43 = vsub.f32 1.0, %v512_v19  ;;  %701 = vrcp.f32 %v1045_v3  ;;  %v489_v44 = vsel %vm1085_vm7, %v1002_v48, %v485_v15  ;;  %v493_v45 = vor.u32 1.1754944e-38, %v492_v55 }
 0x207   :  { %v504_v41 = vsel %vm1100_vm2, %v1015_v10, %v500_v37  ;;  %vm516_vm8 = vweird.f32 %v984_v36  ;;  %v479_v8 = vsel %vm1028_vm13, %v478_v38, %v474_v35  ;;  %v508_v46 = vor.u32 1.1754944e-38, %v507_v17 }
 0x208   :  { %v514_v9 = vmul.f32 %v698_v11, %v513_v43  ;;  %vm517_vm3 = vweird.f32 %v698_v11  ;;  %vm506_vm9 = vcmp.eq.f32.partialorder %v505_v6, 8.507059e+37  ;;  %vm1114_vm10 = vcmp.eq.f32.partialorder %v520_v27, 8.507059e+37 }
 0x209   :  { %v556_v48 = vmul.f32 %v449_v42, %v863_v20  ;;  %v557_v49 = vmul.f32 %v464_v40, %v868_v21  ;;  %v494_v50 = vsel %vm1040_vm4, %v493_v45, %v489_v44  ;;  %v509_v51 = vsel %vm506_vm9, %v508_v46, %v504_v41  ;;  %vm1122_vm13 = vmor %vm516_vm8, %vm517_vm3 }
 0x20a   :  { %v515_v36 = vadd.f32 %v698_v11, %v514_v9  ;;  %v523_v30 = vor.u32 1.1754944e-38, %v522_v39  ;;  %v700_v31 = vpop.eup %699  ;;  %v558_v32 = vmul.f32 %v479_v8, %v873_v22  ;;  %v581_v55 = vsel %vm580_vm1, %v464_v40, %v449_v42 }
 0x20b   :  { %v564_v54 = vadd.f32 %v557_v49, %v556_v48  ;;  %v608_v20 = vsel %vm588_vm14, %v946_v52, %v974_v16  ;;  %v527_v34 = vmul.f32 %v700_v31, %v991_v28  ;;  %v535_v57 = vand.u32 2147483647, %v991_v28 }
 0x20c   :  { %v702_v21 = vpop.eup %701  ;;  %v519_v33 = vsel %vm1122_vm13, %v698_v11, %v515_v36  ;;  %vm1195_vm4 = vcmask 1042434   ;;  %v537_v58 = vand.u32 2147483648, %v991_v28  ;;  %v559_v59 = vmul.f32 %v494_v50, %v878_v23 }
 0x20d   :  { %v583_v29 = vsel %vm1195_vm4, %v479_v8, %v581_v55  ;;  %v542_v22 = vmul.f32 %v702_v21, %v1045_v3  ;;  %v565_v38 = vadd.f32 %v564_v54, %v558_v32  ;;  %v528_v61 = vsub.f32 1.0, %v527_v34 }
 0x20e   :  { %v560_v52 = vmul.f32 %v509_v51, %v883_v24  ;;  %vm1196_vm1 = vcmask 1043459   ;;  %v609_v56 = vsel %vm590_vm12, %v948_v53, %v608_v20  ;;  %v524_v62 = vsel %vm1114_vm10, %v523_v30, %v519_v33 }
 0x20f   :  { %v585_v16 = vsel %vm1196_vm1, %v494_v50, %v583_v29  ;;  %v543_v0 = vsub.f32 1.0, %v542_v22  ;;  %v566_v2 = vadd.f32 %v565_v38, %v559_v59  ;;  %v610_v63 = vsel %vm592_vm15, %v952_v47, %v609_v56 }
 0x210   :  { %v529_v4 = vmul.f32 %v700_v31, %v528_v61  ;;  %vm532_vm0 = vweird.f32 %v700_v31  ;;  %v552_v23 = vand.u32 2147483648, %v1045_v3  ;;  %vm1197_vm5 = vcmask 1044484   ;;  %612 = vst [vmem:[#allocation5 + $0x10] sm:$0xff] %v610_v63 }
 0x211   :  { %v587_v6 = vsel %vm1197_vm5, %v509_v51, %v585_v16  ;;  %v544_v24 = vmul.f32 %v702_v21, %v543_v0  ;;  %vm547_vm11 = vweird.f32 %v702_v21  ;;  %v550_v11 = vand.u32 2147483647, %v1045_v3 }
 0x212   :  { %v567_v53 = vadd.f32 %v566_v2, %v560_v52  ;;  %v530_v12 = vadd.f32 %v700_v31, %v529_v4  ;;  %vm531_vm6 = vweird.f32 %v991_v28  ;;  %v561_v13 = vmul.f32 %v524_v62, %v888_v25 }
 0x213   :  { %vm533_vm7 = vmor %vm531_vm6, %vm532_vm0  ;;  %v538_v1 = vor.u32 1.1754944e-38, %v537_v58  ;;  %v545_v47 = vadd.f32 %v702_v21, %v544_v24  ;;  %vm546_vm2 = vweird.f32 %v1045_v3  ;;  %v589_v14 = vsel %vm588_vm14, %v524_v62, %v587_v6 }
 0x214   :  { %v534_v15 = vsel %vm533_vm7, %v700_v31, %v530_v12  ;;  %vm536_vm8 = vcmp.eq.f32.partialorder %v535_v57, 8.507059e+37  ;;  %vm548_vm3 = vmor %vm546_vm2, %vm547_vm11  ;;  %v553_v17 = vor.u32 1.1754944e-38, %v552_v23  ;;  %v568_v19 = vadd.f32 %v567_v53, %v561_v13 }
 0x215   :  { %v539_v27 = vsel %vm536_vm8, %v538_v1, %v534_v15  ;;  %v549_v35 = vsel %vm548_vm3, %v702_v21, %v545_v47  ;;  %vm551_vm9 = vcmp.eq.f32.partialorder %v550_v11, 8.507059e+37 }
 0x216   :  { %v554_v5 = vsel %vm551_vm9, %v553_v17, %v549_v35  ;;  %v562_v28 = vmul.f32 %v539_v27, %v893_v26  ;;  %v591_v25 = vsel %vm590_vm12, %v539_v27, %v589_v14 }
 0x217   :  { %v593_v37 = vsel %vm592_vm15, %v554_v5, %v591_v25  ;;  %v563_v3 = vmul.f32 %v554_v5, %v940_v60 }
 0x218   :  { %v569_v39 = vadd.f32 %v568_v19, %v562_v28  ;;  %595 = vst [vmem:[#allocation5 + $0x8] sm:$0xff] %v593_v37 }
 0x21a   :  { %v570_v42 = vadd.f32 %v569_v39, %v563_v3 }
 0x21c   :  { %571 = vst [vmem:[#allocation5] sm:$0xff] %v570_v42 }
 0x21d   :  { %625 = dma.vmem_to_hbm [thread:$0]  %s618_s13, 384, %s620_s15, [#allocation4], %s756_s23, %s756_s23, %s757_s24  }
 0x21e   :  { %753 = dma.done.wait [#allocation4], 384  }
 0x21f   :  { %754 = vsyncadd [#allocation4], 4294966912 }
 0x220   :  { %630 = vsyncpa [#allocation3], 1 }
 0x221   :  { %631 = vsyncpa [#allocation4], 1 }

</bundles_post_ra>
